<compile_context>
chip_gen: v5e
topology: v5e:2x2
jax: 0.10.0
libtpu: 0.0.40
codegen_flags: <defaults>
</compile_context>

<pallas_src>
import functools

import jax
import jax.numpy as jnp
from jax.experimental import pallas as pl
from jax.experimental.pallas import tpu as pltpu


FEAT = 256      # preEncoder output channels (resnet18 feature size)
HIDDEN = 128    # pred hidden width
OUT = 4         # pred output width
OUT_PAD = 128   # lane-dense padded output width (sliced back to OUT outside)
PATCH = 4       # stand-in encoder patch / stride


def _round_up(x, m):
    return ((x + m - 1) // m) * m


def _pick_tile_ph(ph, in_ch, width, vmem_block_cap=6 * 1024 * 1024):
    """Largest divisor of ph whose *padded* VMEM block stays under the cap.

    One patch-row block element is C slabs laid out as (PATCH->8 sublanes,
    W->round_up(W,128) lanes) f32 in VMEM. Cap keeps double-buffered input plus the
    resident weights comfortably inside v7x's 32 MiB scoped VMEM default.
    """
    padded_row_bytes = in_ch * 8 * _round_up(width, 128) * 4
    cap = max(1, vmem_block_cap // padded_row_bytes)
    best = 1
    for d in range(1, ph + 1):
        if ph % d == 0 and d <= cap:
            best = d
    return best


# ----------------------------- fused Pallas kernel -------------------------- #

def _fused_compass_kernel(x_ref, w_exp_ref, b_enc_ref, w1_ref, b1_ref,
                          w2_ref, b2_ref, o_ref, acc_ref, *, inv_p):
    """Streaming pixel-sum + (linear) encoder + mean-pool + Linear/ReLU/Linear head.

    Grid = (B, n_ph). The n_ph axis is a reduction: a per-batch (C, PATCH, W) f32
    row-phase pixel sum is carried in VMEM scratch; the encoder matmul and the tiny
    head MLP run once on the last reduction step.
    """
    in_ch, patch, _ = acc_ref.shape
    r = pl.program_id(1)

    @pl.when(r == 0)
    def _init():
        acc_ref[...] = jnp.zeros_like(acc_ref)

    # Per-step work: pure VPU adds over the patch-row axis (axis=1). No MXU pushes,
    # no within-vreg reduce, no intermediate feats tensor -> step is DMA-bound.
    acc_ref[...] += jnp.sum(x_ref[...], axis=1)          # (C, PATCH, W) f32

    @pl.when(r == pl.num_programs(1) - 1)
    def _finalize():
        acc = acc_ref[...]                               # (C, PATCH, W) pixel sums
        # Linear encoder applied to the pooled patch vector, expressed as a few tiny
        # (1, W) @ (W, FEAT) matmuls against the pre-expanded weight (no in-kernel
        # reshapes / flattens needed). Runs once per image -> negligible cost.
        feat = jnp.zeros((1, FEAT), jnp.float32)
        for ci in range(in_ch):
            for dy in range(patch):
                row = acc[ci, dy:dy + 1, :]              # (1, W)
                feat = feat + jnp.dot(row, w_exp_ref[ci, dy],
                                      preferred_element_type=jnp.float32)
        # Mean over all T'*H'*W' positions; encoder bias added once post-pooling
        # (equivalent to per-patch bias then mean).
        pooled = feat * inv_p + b_enc_ref[...]           # (1, FEAT)
        h = jnp.dot(pooled, w1_ref[...],
                    preferred_element_type=jnp.float32) + b1_ref[...]
        h = jnp.maximum(h, 0.0)                          # ReLU
        out = jnp.dot(h, w2_ref[...],
                      preferred_element_type=jnp.float32) + b2_ref[...]
        o_ref[...] = out.astype(o_ref.dtype)             # (1, OUT_PAD), lane-dense


def compass_fused_call(x5, kp, *, tile_ph, p_valid):
    B, C, ph, patch, W = x5.shape
    n_ph = ph // tile_ph
    kernel = functools.partial(_fused_compass_kernel, inv_p=1.0 / float(p_valid))

    # Weight operands have constant index maps so they are DMA'd once and stay
    # resident; their total (<0.5 MiB here) makes extra buffering irrelevant.
    # (pl.Buffered(1) on them / pl.Buffered(3) on x are options if tiles grow.)
    out = pl.pallas_call(
        kernel,
        out_shape=jax.ShapeDtypeStruct((B, 1, OUT_PAD), jnp.float32),
        grid_spec=pltpu.PrefetchScalarGridSpec(
            num_scalar_prefetch=0,
            grid=(B, n_ph),
            in_specs=[
                # Raw image rows, f32, read exactly once from HBM (no im2col, no pad).
                pl.BlockSpec((None, C, tile_ph, patch, W),
                             lambda b, r: (b, 0, r, 0, 0)),
                pl.BlockSpec((C, patch, W, FEAT), lambda b, r: (0, 0, 0, 0)),  # w_exp
                pl.BlockSpec((1, FEAT),           lambda b, r: (0, 0)),        # b_enc
                pl.BlockSpec((FEAT, HIDDEN),      lambda b, r: (0, 0)),        # w1
                pl.BlockSpec((1, HIDDEN),         lambda b, r: (0, 0)),        # b1
                pl.BlockSpec((HIDDEN, OUT_PAD),   lambda b, r: (0, 0)),        # w2 (padded)
                pl.BlockSpec((1, OUT_PAD),        lambda b, r: (0, 0)),        # b2 (padded)
            ],
            out_specs=pl.BlockSpec((None, 1, OUT_PAD), lambda b, r: (b, 0, 0)),
            scratch_shapes=[pltpu.VMEM((C, patch, W), jnp.float32)],
        ),
        compiler_params=pltpu.CompilerParams(
            dimension_semantics=("parallel", "arbitrary"),
            vmem_limit_bytes=32 * 1024 * 1024,
        ),
    )(x5, kp["w_exp"], kp["b_enc"], kp["w1"], kp["b1"], kp["w2p"], kp["b2p"])

    return out[:, 0, :OUT]                               # (B, 4)


# ----------------------------- parameters ---------------------------------- #

def init_params(key, in_ch=3):
    """'PyTorch-layout' stand-in parameters (all f32)."""
    ks = jax.random.split(key, 6)
    kdim = in_ch * PATCH * PATCH
    w_enc = jax.random.normal(ks[0], (kdim, FEAT), jnp.float32) / jnp.sqrt(kdim)
    b_enc = jax.random.normal(ks[1], (1, FEAT), jnp.float32) * 0.01
    w1 = jax.random.normal(ks[2], (FEAT, HIDDEN), jnp.float32) / jnp.sqrt(FEAT)
    b1 = jax.random.normal(ks[3], (1, HIDDEN), jnp.float32) * 0.01
    w2 = jax.random.normal(ks[4], (HIDDEN, OUT), jnp.float32) / jnp.sqrt(HIDDEN)
    b2 = jax.random.normal(ks[5], (1, OUT), jnp.float32) * 0.01
    return dict(w_enc=w_enc, b_enc=b_enc, w1=w1, b1=b1, w2=w2, b2=b2)


def prepare_params(params, width):
    """One-time (hoisted out of the forward call) conversion to kernel layouts.

    w_exp[c, dy, j, :] = w_enc[c*PATCH*PATCH + dy*PATCH + (j % PATCH), :] so the
    in-kernel contraction of row-phase pixel sums against w_exp equals the original
    per-patch conv followed by the mean pool (valid because the stand-in is linear).
    """
    kdim, feat = params["w_enc"].shape
    in_ch = kdim // (PATCH * PATCH)
    pw = width // PATCH
    w4 = params["w_enc"].reshape(in_ch, PATCH, PATCH, feat)           # (c, dy, dx, o)
    w_exp = jnp.broadcast_to(w4[:, :, None, :, :],
                             (in_ch, PATCH, pw, PATCH, feat))
    w_exp = w_exp.reshape(in_ch, PATCH, pw * PATCH, feat)             # j % PATCH = dx
    w2p = jnp.pad(params["w2"], ((0, 0), (0, OUT_PAD - OUT)))
    b2p = jnp.pad(params["b2"], ((0, 0), (0, OUT_PAD - OUT)))
    return dict(w_exp=w_exp, b_enc=params["b_enc"], w1=params["w1"],
                b1=params["b1"], w2p=w2p, b2p=b2p)


# ----------------------------- forward & reference -------------------------- #

def compass_forward(x, kparams):
    """x: (B, 3, H, W) NCHW float32, matching the PyTorch module's input."""
    B, C, H, W = x.shape
    assert H % PATCH == 0 and W % PATCH == 0
    ph, pw = H // PATCH, W // PATCH
    # unsqueeze(2) adds T'=1; it only contributes to the pooled position count
    # P = T'*H'*W' = ph*pw. The reshape below is a free contiguous split of H
    # (no HBM copy, no padding) so x is streamed from HBM exactly once.
    x5 = x.reshape(B, C, ph, PATCH, W)
    tile_ph = _pick_tile_ph(ph, C, W)
    return compass_fused_call(x5, kparams, tile_ph=tile_ph, p_valid=ph * pw)


def compass_reference(x, params):
    """Pure-JAX reference of the same stand-in forward (f32 everywhere)."""
    B, C, H, W = x.shape
    ph, pw = H // PATCH, W // PATCH
    xp = x.reshape(B, C, ph, PATCH, pw, PATCH)
    xp = xp.transpose(0, 2, 4, 1, 3, 5).reshape(B, ph * pw, C * PATCH * PATCH)
    feats = xp @ params["w_enc"] + params["b_enc"]       # (B, P, 256)
    pooled = feats.mean(axis=1)                          # (B, 256)
    h = jnp.maximum(pooled @ params["w1"] + params["b1"], 0.0)
    return h @ params["w2"] + params["b2"]               # (B, 4)


# ----------------------------- main ----------------------------------------- #

if __name__ == "__main__":
    key = jax.random.PRNGKey(0)
    kx, kp = jax.random.split(key)

    B, Cin, Himg, Wimg = 2, 3, 16, 16
    x = jax.random.normal(kx, (B, Cin, Himg, Wimg), jnp.float32)   # NCHW, like PyTorch
    params = init_params(kp, in_ch=Cin)
    kparams = prepare_params(params, Wimg)          # one-time prep, NOT per call

    fwd = jax.jit(compass_forward)
    y = jax.block_until_ready(fwd(x, kparams))
    assert y.shape == (B, OUT) and y.dtype == jnp.float32

    y_ref = jax.block_until_ready(compass_reference(x, params))
    assert float(jnp.max(jnp.abs(y - y_ref))) < 1e-3

    print("KERNEL_OK")
</pallas_src>

<mosaic_0001>
module attributes {stable_mosaic.version = 11 : i64} {
  func.func @_fused_compass_kernel(%arg0: i32, %arg1: i32, %arg2: memref<1x3x4x4x16xf32, #tpu.memory_space<vmem>>, %arg3: memref<3x4x16x256xf32, #tpu.memory_space<vmem>>, %arg4: memref<1x256xf32, #tpu.memory_space<vmem>>, %arg5: memref<256x128xf32, #tpu.memory_space<vmem>>, %arg6: memref<1x128xf32, #tpu.memory_space<vmem>>, %arg7: memref<128x128xf32, #tpu.memory_space<vmem>>, %arg8: memref<1x128xf32, #tpu.memory_space<vmem>>, %arg9: memref<1x1x128xf32, #tpu.memory_space<vmem>>, %arg10: memref<3x4x16xf32, #tpu.memory_space<vmem>>) attributes {dimension_semantics = [#tpu.dimension_semantics<parallel>, #tpu.dimension_semantics<arbitrary>], iteration_bounds = array<i64: 2, 1>, scalar_prefetch = 0 : i64, scratch_operands = 1 : i64, tpu.core_type = #tpu.core_type<tc>, window_params = [{transform_indices = @transform_0, window_bounds = array<i64: 1, 3, 4, 4, 16>}, {pipeline_mode = #tpu.pipeline_mode<synchronous>, transform_indices = @transform_1, window_bounds = array<i64: 3, 4, 16, 256>}, {pipeline_mode = #tpu.pipeline_mode<synchronous>, transform_indices = @transform_2, window_bounds = array<i64: 1, 256>}, {pipeline_mode = #tpu.pipeline_mode<synchronous>, transform_indices = @transform_3, window_bounds = array<i64: 256, 128>}, {pipeline_mode = #tpu.pipeline_mode<synchronous>, transform_indices = @transform_4, window_bounds = array<i64: 1, 128>}, {pipeline_mode = #tpu.pipeline_mode<synchronous>, transform_indices = @transform_5, window_bounds = array<i64: 128, 128>}, {pipeline_mode = #tpu.pipeline_mode<synchronous>, transform_indices = @transform_6, window_bounds = array<i64: 1, 128>}, {transform_indices = @transform_7, window_bounds = array<i64: 1, 1, 128>}]} {
    %c0_i32 = arith.constant 0 : i32
    %0 = arith.cmpi eq, %arg1, %c0_i32 : i32
    %1 = arith.extui %0 : i1 to i32
    %c0_i32_0 = arith.constant 0 : i32
    %2 = arith.cmpi ne, %1, %c0_i32_0 : i32
    scf.if %2 {
      %cst_13 = arith.constant 0.000000e+00 : f32
      %12 = vector.broadcast %cst_13 : f32 to vector<3x4x16xf32>
      %c0_14 = arith.constant 0 : index
      %c0_15 = arith.constant 0 : index
      %c0_16 = arith.constant 0 : index
      %13 = vector.load %arg10[%c0_14, %c0_15, %c0_16] : memref<3x4x16xf32, #tpu.memory_space<vmem>>, vector<3x4x16xf32>
      tpu.vector_store %arg10[%c0_14, %c0_15, %c0_16], %12 {strides = array<i32>} : memref<3x4x16xf32, #tpu.memory_space<vmem>>, vector<3x4x16xf32>,
    } else {
    }
    %c0 = arith.constant 0 : index
    %c0_1 = arith.constant 0 : index
    %c0_2 = arith.constant 0 : index
    %3 = vector.load %arg10[%c0, %c0_1, %c0_2] : memref<3x4x16xf32, #tpu.memory_space<vmem>>, vector<3x4x16xf32>
    %c0_3 = arith.constant 0 : index
    %c0_4 = arith.constant 0 : index
    %c0_5 = arith.constant 0 : index
    %c0_6 = arith.constant 0 : index
    %c0_7 = arith.constant 0 : index
    %4 = vector.load %arg2[%c0_3, %c0_4, %c0_5, %c0_6, %c0_7] : memref<1x3x4x4x16xf32, #tpu.memory_space<vmem>>, vector<1x3x4x4x16xf32>
    %5 = vector.shape_cast %4 : vector<1x3x4x4x16xf32> to vector<3x4x4x16xf32>
    %cst = arith.constant dense<0.000000e+00> : vector<3x4x16xf32>
    %6 = vector.multi_reduction <add>, %5, %cst [1] : vector<3x4x4x16xf32> to vector<3x4x16xf32>
    %7 = arith.addf %3, %6 : vector<3x4x16xf32>
    %c0_8 = arith.constant 0 : index
    %c0_9 = arith.constant 0 : index
    %c0_10 = arith.constant 0 : index
    %8 = vector.load %arg10[%c0_8, %c0_9, %c0_10] : memref<3x4x16xf32, #tpu.memory_space<vmem>>, vector<3x4x16xf32>
    tpu.vector_store %arg10[%c0_8, %c0_9, %c0_10], %7 {strides = array<i32>} : memref<3x4x16xf32, #tpu.memory_space<vmem>>, vector<3x4x16xf32>,
    %c0_i32_11 = arith.constant 0 : i32
    %9 = arith.cmpi eq, %arg1, %c0_i32_11 : i32
    %10 = arith.extui %9 : i1 to i32
    %c0_i32_12 = arith.constant 0 : i32
    %11 = arith.cmpi ne, %10, %c0_i32_12 : i32
    scf.if %11 {
      %c0_13 = arith.constant 0 : index
      %c0_14 = arith.constant 0 : index
      %c0_15 = arith.constant 0 : index
      %12 = vector.load %arg10[%c0_13, %c0_14, %c0_15] : memref<3x4x16xf32, #tpu.memory_space<vmem>>, vector<3x4x16xf32>
      %cst_16 = arith.constant 0.000000e+00 : f32
      %13 = vector.broadcast %cst_16 : f32 to vector<1x256xf32>
      %14 = vector.extract_strided_slice %12 {offsets = [0, 0, 0], sizes = [1, 1, 16], strides = [1, 1, 1]} : vector<3x4x16xf32> to vector<1x1x16xf32>
      %15 = vector.shape_cast %14 : vector<1x1x16xf32> to vector<1x16xf32>
      %c0_17 = arith.constant 0 : index
      %c0_18 = arith.constant 0 : index
      %c0_19 = arith.constant 0 : index
      %c0_20 = arith.constant 0 : index
      %16 = vector.load %arg3[%c0_17, %c0_18, %c0_19, %c0_20] : memref<3x4x16x256xf32, #tpu.memory_space<vmem>>, vector<1x1x16x256xf32>
      %17 = vector.shape_cast %16 : vector<1x1x16x256xf32> to vector<16x256xf32>
      %cst_21 = arith.constant dense<0.000000e+00> : vector<1x256xf32>
      %18 = tpu.matmul %15, %17, %cst_21 {dimension_numbers = #tpu.dot_dimension_numbers<[1], [0], [0], [1], [0, 0, 1, 1], [], []>} : vector<1x16xf32>, vector<16x256xf32>, vector<1x256xf32> -> vector<1x256xf32>
      %19 = arith.addf %13, %18 : vector<1x256xf32>
      %20 = vector.extract_strided_slice %12 {offsets = [0, 1, 0], sizes = [1, 1, 16], strides = [1, 1, 1]} : vector<3x4x16xf32> to vector<1x1x16xf32>
      %21 = vector.shape_cast %20 : vector<1x1x16xf32> to vector<1x16xf32>
      %c0_22 = arith.constant 0 : index
      %c1 = arith.constant 1 : index
      %c0_23 = arith.constant 0 : index
      %c0_24 = arith.constant 0 : index
      %22 = vector.load %arg3[%c0_22, %c1, %c0_23, %c0_24] : memref<3x4x16x256xf32, #tpu.memory_space<vmem>>, vector<1x1x16x256xf32>
      %23 = vector.shape_cast %22 : vector<1x1x16x256xf32> to vector<16x256xf32>
      %cst_25 = arith.constant dense<0.000000e+00> : vector<1x256xf32>
      %24 = tpu.matmul %21, %23, %cst_25 {dimension_numbers = #tpu.dot_dimension_numbers<[1], [0], [0], [1], [0, 0, 1, 1], [], []>} : vector<1x16xf32>, vector<16x256xf32>, vector<1x256xf32> -> vector<1x256xf32>
      %25 = arith.addf %19, %24 : vector<1x256xf32>
      %26 = vector.extract_strided_slice %12 {offsets = [0, 2, 0], sizes = [1, 1, 16], strides = [1, 1, 1]} : vector<3x4x16xf32> to vector<1x1x16xf32>
      %27 = vector.shape_cast %26 : vector<1x1x16xf32> to vector<1x16xf32>
      %c0_26 = arith.constant 0 : index
      %c2 = arith.constant 2 : index
      %c0_27 = arith.constant 0 : index
      %c0_28 = arith.constant 0 : index
      %28 = vector.load %arg3[%c0_26, %c2, %c0_27, %c0_28] : memref<3x4x16x256xf32, #tpu.memory_space<vmem>>, vector<1x1x16x256xf32>
      %29 = vector.shape_cast %28 : vector<1x1x16x256xf32> to vector<16x256xf32>
      %cst_29 = arith.constant dense<0.000000e+00> : vector<1x256xf32>
      %30 = tpu.matmul %27, %29, %cst_29 {dimension_numbers = #tpu.dot_dimension_numbers<[1], [0], [0], [1], [0, 0, 1, 1], [], []>} : vector<1x16xf32>, vector<16x256xf32>, vector<1x256xf32> -> vector<1x256xf32>
      %31 = arith.addf %25, %30 : vector<1x256xf32>
      %32 = vector.extract_strided_slice %12 {offsets = [0, 3, 0], sizes = [1, 1, 16], strides = [1, 1, 1]} : vector<3x4x16xf32> to vector<1x1x16xf32>
      %33 = vector.shape_cast %32 : vector<1x1x16xf32> to vector<1x16xf32>
      %c0_30 = arith.constant 0 : index
      %c3 = arith.constant 3 : index
      %c0_31 = arith.constant 0 : index
      %c0_32 = arith.constant 0 : index
      %34 = vector.load %arg3[%c0_30, %c3, %c0_31, %c0_32] : memref<3x4x16x256xf32, #tpu.memory_space<vmem>>, vector<1x1x16x256xf32>
      %35 = vector.shape_cast %34 : vector<1x1x16x256xf32> to vector<16x256xf32>
      %cst_33 = arith.constant dense<0.000000e+00> : vector<1x256xf32>
      %36 = tpu.matmul %33, %35, %cst_33 {dimension_numbers = #tpu.dot_dimension_numbers<[1], [0], [0], [1], [0, 0, 1, 1], [], []>} : vector<1x16xf32>, vector<16x256xf32>, vector<1x256xf32> -> vector<1x256xf32>
      %37 = arith.addf %31, %36 : vector<1x256xf32>
      %38 = vector.extract_strided_slice %12 {offsets = [1, 0, 0], sizes = [1, 1, 16], strides = [1, 1, 1]} : vector<3x4x16xf32> to vector<1x1x16xf32>
      %39 = vector.shape_cast %38 : vector<1x1x16xf32> to vector<1x16xf32>
      %c1_34 = arith.constant 1 : index
      %c0_35 = arith.constant 0 : index
      %c0_36 = arith.constant 0 : index
      %c0_37 = arith.constant 0 : index
      %40 = vector.load %arg3[%c1_34, %c0_35, %c0_36, %c0_37] : memref<3x4x16x256xf32, #tpu.memory_space<vmem>>, vector<1x1x16x256xf32>
      %41 = vector.shape_cast %40 : vector<1x1x16x256xf32> to vector<16x256xf32>
      %cst_38 = arith.constant dense<0.000000e+00> : vector<1x256xf32>
      %42 = tpu.matmul %39, %41, %cst_38 {dimension_numbers = #tpu.dot_dimension_numbers<[1], [0], [0], [1], [0, 0, 1, 1], [], []>} : vector<1x16xf32>, vector<16x256xf32>, vector<1x256xf32> -> vector<1x256xf32>
      %43 = arith.addf %37, %42 : vector<1x256xf32>
      %44 = vector.extract_strided_slice %12 {offsets = [1, 1, 0], sizes = [1, 1, 16], strides = [1, 1, 1]} : vector<3x4x16xf32> to vector<1x1x16xf32>
      %45 = vector.shape_cast %44 : vector<1x1x16xf32> to vector<1x16xf32>
      %c1_39 = arith.constant 1 : index
      %c1_40 = arith.constant 1 : index
      %c0_41 = arith.constant 0 : index
      %c0_42 = arith.constant 0 : index
      %46 = vector.load %arg3[%c1_39, %c1_40, %c0_41, %c0_42] : memref<3x4x16x256xf32, #tpu.memory_space<vmem>>, vector<1x1x16x256xf32>
      %47 = vector.shape_cast %46 : vector<1x1x16x256xf32> to vector<16x256xf32>
      %cst_43 = arith.constant dense<0.000000e+00> : vector<1x256xf32>
      %48 = tpu.matmul %45, %47, %cst_43 {dimension_numbers = #tpu.dot_dimension_numbers<[1], [0], [0], [1], [0, 0, 1, 1], [], []>} : vector<1x16xf32>, vector<16x256xf32>, vector<1x256xf32> -> vector<1x256xf32>
      %49 = arith.addf %43, %48 : vector<1x256xf32>
      %50 = vector.extract_strided_slice %12 {offsets = [1, 2, 0], sizes = [1, 1, 16], strides = [1, 1, 1]} : vector<3x4x16xf32> to vector<1x1x16xf32>
      %51 = vector.shape_cast %50 : vector<1x1x16xf32> to vector<1x16xf32>
      %c1_44 = arith.constant 1 : index
      %c2_45 = arith.constant 2 : index
      %c0_46 = arith.constant 0 : index
      %c0_47 = arith.constant 0 : index
      %52 = vector.load %arg3[%c1_44, %c2_45, %c0_46, %c0_47] : memref<3x4x16x256xf32, #tpu.memory_space<vmem>>, vector<1x1x16x256xf32>
      %53 = vector.shape_cast %52 : vector<1x1x16x256xf32> to vector<16x256xf32>
      %cst_48 = arith.constant dense<0.000000e+00> : vector<1x256xf32>
      %54 = tpu.matmul %51, %53, %cst_48 {dimension_numbers = #tpu.dot_dimension_numbers<[1], [0], [0], [1], [0, 0, 1, 1], [], []>} : vector<1x16xf32>, vector<16x256xf32>, vector<1x256xf32> -> vector<1x256xf32>
      %55 = arith.addf %49, %54 : vector<1x256xf32>
      %56 = vector.extract_strided_slice %12 {offsets = [1, 3, 0], sizes = [1, 1, 16], strides = [1, 1, 1]} : vector<3x4x16xf32> to vector<1x1x16xf32>
      %57 = vector.shape_cast %56 : vector<1x1x16xf32> to vector<1x16xf32>
      %c1_49 = arith.constant 1 : index
      %c3_50 = arith.constant 3 : index
      %c0_51 = arith.constant 0 : index
      %c0_52 = arith.constant 0 : index
      %58 = vector.load %arg3[%c1_49, %c3_50, %c0_51, %c0_52] : memref<3x4x16x256xf32, #tpu.memory_space<vmem>>, vector<1x1x16x256xf32>
      %59 = vector.shape_cast %58 : vector<1x1x16x256xf32> to vector<16x256xf32>
      %cst_53 = arith.constant dense<0.000000e+00> : vector<1x256xf32>
      %60 = tpu.matmul %57, %59, %cst_53 {dimension_numbers = #tpu.dot_dimension_numbers<[1], [0], [0], [1], [0, 0, 1, 1], [], []>} : vector<1x16xf32>, vector<16x256xf32>, vector<1x256xf32> -> vector<1x256xf32>
      %61 = arith.addf %55, %60 : vector<1x256xf32>
      %62 = vector.extract_strided_slice %12 {offsets = [2, 0, 0], sizes = [1, 1, 16], strides = [1, 1, 1]} : vector<3x4x16xf32> to vector<1x1x16xf32>
      %63 = vector.shape_cast %62 : vector<1x1x16xf32> to vector<1x16xf32>
      %c2_54 = arith.constant 2 : index
      %c0_55 = arith.constant 0 : index
      %c0_56 = arith.constant 0 : index
      %c0_57 = arith.constant 0 : index
      %64 = vector.load %arg3[%c2_54, %c0_55, %c0_56, %c0_57] : memref<3x4x16x256xf32, #tpu.memory_space<vmem>>, vector<1x1x16x256xf32>
      %65 = vector.shape_cast %64 : vector<1x1x16x256xf32> to vector<16x256xf32>
      %cst_58 = arith.constant dense<0.000000e+00> : vector<1x256xf32>
      %66 = tpu.matmul %63, %65, %cst_58 {dimension_numbers = #tpu.dot_dimension_numbers<[1], [0], [0], [1], [0, 0, 1, 1], [], []>} : vector<1x16xf32>, vector<16x256xf32>, vector<1x256xf32> -> vector<1x256xf32>
      %67 = arith.addf %61, %66 : vector<1x256xf32>
      %68 = vector.extract_strided_slice %12 {offsets = [2, 1, 0], sizes = [1, 1, 16], strides = [1, 1, 1]} : vector<3x4x16xf32> to vector<1x1x16xf32>
      %69 = vector.shape_cast %68 : vector<1x1x16xf32> to vector<1x16xf32>
      %c2_59 = arith.constant 2 : index
      %c1_60 = arith.constant 1 : index
      %c0_61 = arith.constant 0 : index
      %c0_62 = arith.constant 0 : index
      %70 = vector.load %arg3[%c2_59, %c1_60, %c0_61, %c0_62] : memref<3x4x16x256xf32, #tpu.memory_space<vmem>>, vector<1x1x16x256xf32>
      %71 = vector.shape_cast %70 : vector<1x1x16x256xf32> to vector<16x256xf32>
      %cst_63 = arith.constant dense<0.000000e+00> : vector<1x256xf32>
      %72 = tpu.matmul %69, %71, %cst_63 {dimension_numbers = #tpu.dot_dimension_numbers<[1], [0], [0], [1], [0, 0, 1, 1], [], []>} : vector<1x16xf32>, vector<16x256xf32>, vector<1x256xf32> -> vector<1x256xf32>
      %73 = arith.addf %67, %72 : vector<1x256xf32>
      %74 = vector.extract_strided_slice %12 {offsets = [2, 2, 0], sizes = [1, 1, 16], strides = [1, 1, 1]} : vector<3x4x16xf32> to vector<1x1x16xf32>
      %75 = vector.shape_cast %74 : vector<1x1x16xf32> to vector<1x16xf32>
      %c2_64 = arith.constant 2 : index
      %c2_65 = arith.constant 2 : index
      %c0_66 = arith.constant 0 : index
      %c0_67 = arith.constant 0 : index
      %76 = vector.load %arg3[%c2_64, %c2_65, %c0_66, %c0_67] : memref<3x4x16x256xf32, #tpu.memory_space<vmem>>, vector<1x1x16x256xf32>
      %77 = vector.shape_cast %76 : vector<1x1x16x256xf32> to vector<16x256xf32>
      %cst_68 = arith.constant dense<0.000000e+00> : vector<1x256xf32>
      %78 = tpu.matmul %75, %77, %cst_68 {dimension_numbers = #tpu.dot_dimension_numbers<[1], [0], [0], [1], [0, 0, 1, 1], [], []>} : vector<1x16xf32>, vector<16x256xf32>, vector<1x256xf32> -> vector<1x256xf32>
      %79 = arith.addf %73, %78 : vector<1x256xf32>
      %80 = vector.extract_strided_slice %12 {offsets = [2, 3, 0], sizes = [1, 1, 16], strides = [1, 1, 1]} : vector<3x4x16xf32> to vector<1x1x16xf32>
      %81 = vector.shape_cast %80 : vector<1x1x16xf32> to vector<1x16xf32>
      %c2_69 = arith.constant 2 : index
      %c3_70 = arith.constant 3 : index
      %c0_71 = arith.constant 0 : index
      %c0_72 = arith.constant 0 : index
      %82 = vector.load %arg3[%c2_69, %c3_70, %c0_71, %c0_72] : memref<3x4x16x256xf32, #tpu.memory_space<vmem>>, vector<1x1x16x256xf32>
      %83 = vector.shape_cast %82 : vector<1x1x16x256xf32> to vector<16x256xf32>
      %cst_73 = arith.constant dense<0.000000e+00> : vector<1x256xf32>
      %84 = tpu.matmul %81, %83, %cst_73 {dimension_numbers = #tpu.dot_dimension_numbers<[1], [0], [0], [1], [0, 0, 1, 1], [], []>} : vector<1x16xf32>, vector<16x256xf32>, vector<1x256xf32> -> vector<1x256xf32>
      %85 = arith.addf %79, %84 : vector<1x256xf32>
      %cst_74 = arith.constant 6.250000e-02 : f32
      %86 = vector.broadcast %cst_74 : f32 to vector<1x256xf32>
      %87 = arith.mulf %85, %86 : vector<1x256xf32>
      %c0_75 = arith.constant 0 : index
      %c0_76 = arith.constant 0 : index
      %88 = vector.load %arg4[%c0_75, %c0_76] : memref<1x256xf32, #tpu.memory_space<vmem>>, vector<1x256xf32>
      %89 = arith.addf %87, %88 : vector<1x256xf32>
      %c0_77 = arith.constant 0 : index
      %c0_78 = arith.constant 0 : index
      %90 = vector.load %arg5[%c0_77, %c0_78] : memref<256x128xf32, #tpu.memory_space<vmem>>, vector<256x128xf32>
      %cst_79 = arith.constant dense<0.000000e+00> : vector<1x128xf32>
      %91 = tpu.matmul %89, %90, %cst_79 {dimension_numbers = #tpu.dot_dimension_numbers<[1], [0], [0], [1], [0, 0, 1, 1], [], []>} : vector<1x256xf32>, vector<256x128xf32>, vector<1x128xf32> -> vector<1x128xf32>
      %c0_80 = arith.constant 0 : index
      %c0_81 = arith.constant 0 : index
      %92 = vector.load %arg6[%c0_80, %c0_81] : memref<1x128xf32, #tpu.memory_space<vmem>>, vector<1x128xf32>
      %93 = arith.addf %91, %92 : vector<1x128xf32>
      %cst_82 = arith.constant 0.000000e+00 : f32
      %94 = vector.broadcast %cst_82 : f32 to vector<1x128xf32>
      %95 = arith.maximumf %93, %94 : vector<1x128xf32>
      %c0_83 = arith.constant 0 : index
      %c0_84 = arith.constant 0 : index
      %96 = vector.load %arg7[%c0_83, %c0_84] : memref<128x128xf32, #tpu.memory_space<vmem>>, vector<128x128xf32>
      %cst_85 = arith.constant dense<0.000000e+00> : vector<1x128xf32>
      %97 = tpu.matmul %95, %96, %cst_85 {dimension_numbers = #tpu.dot_dimension_numbers<[1], [0], [0], [1], [0, 0, 1, 1], [], []>} : vector<1x128xf32>, vector<128x128xf32>, vector<1x128xf32> -> vector<1x128xf32>
      %c0_86 = arith.constant 0 : index
      %c0_87 = arith.constant 0 : index
      %98 = vector.load %arg8[%c0_86, %c0_87] : memref<1x128xf32, #tpu.memory_space<vmem>>, vector<1x128xf32>
      %99 = arith.addf %97, %98 : vector<1x128xf32>
      %c0_88 = arith.constant 0 : index
      %c0_89 = arith.constant 0 : index
      %c0_90 = arith.constant 0 : index
      %100 = vector.load %arg9[%c0_88, %c0_89, %c0_90] : memref<1x1x128xf32, #tpu.memory_space<vmem>>, vector<1x1x128xf32>
      %101 = vector.shape_cast %100 : vector<1x1x128xf32> to vector<1x128xf32>
      %102 = vector.shape_cast %99 : vector<1x128xf32> to vector<1x1x128xf32>
      tpu.vector_store %arg9[%c0_88, %c0_89, %c0_90], %102 {strides = array<i32>} : memref<1x1x128xf32, #tpu.memory_space<vmem>>, vector<1x1x128xf32>,
    } else {
    }
    return
  }
  func.func @transform_0(%arg0: i32, %arg1: i32) -> (i32, i32, i32, i32, i32) {
    %c0_i32 = arith.constant 0 : i32
    %c0_i32_0 = arith.constant 0 : i32
    %c0_i32_1 = arith.constant 0 : i32
    %c0_i32_2 = arith.constant 0 : i32
    return %arg0, %c0_i32, %arg1, %c0_i32_0, %c0_i32_1 : i32, i32, i32, i32, i32
  }
  func.func @transform_1(%arg0: i32, %arg1: i32) -> (i32, i32, i32, i32) {
    %c0_i32 = arith.constant 0 : i32
    %c0_i32_0 = arith.constant 0 : i32
    %c0_i32_1 = arith.constant 0 : i32
    %c0_i32_2 = arith.constant 0 : i32
    %c0_i32_3 = arith.constant 0 : i32
    return %c0_i32, %c0_i32_0, %c0_i32_1, %c0_i32_2 : i32, i32, i32, i32
  }
  func.func @transform_2(%arg0: i32, %arg1: i32) -> (i32, i32) {
    %c0_i32 = arith.constant 0 : i32
    %c0_i32_0 = arith.constant 0 : i32
    %c0_i32_1 = arith.constant 0 : i32
    return %c0_i32, %c0_i32_0 : i32, i32
  }
  func.func @transform_3(%arg0: i32, %arg1: i32) -> (i32, i32) {
    %c0_i32 = arith.constant 0 : i32
    %c0_i32_0 = arith.constant 0 : i32
    %c0_i32_1 = arith.constant 0 : i32
    return %c0_i32, %c0_i32_0 : i32, i32
  }
  func.func @transform_4(%arg0: i32, %arg1: i32) -> (i32, i32) {
    %c0_i32 = arith.constant 0 : i32
    %c0_i32_0 = arith.constant 0 : i32
    %c0_i32_1 = arith.constant 0 : i32
    return %c0_i32, %c0_i32_0 : i32, i32
  }
  func.func @transform_5(%arg0: i32, %arg1: i32) -> (i32, i32) {
    %c0_i32 = arith.constant 0 : i32
    %c0_i32_0 = arith.constant 0 : i32
    %c0_i32_1 = arith.constant 0 : i32
    return %c0_i32, %c0_i32_0 : i32, i32
  }
  func.func @transform_6(%arg0: i32, %arg1: i32) -> (i32, i32) {
    %c0_i32 = arith.constant 0 : i32
    %c0_i32_0 = arith.constant 0 : i32
    %c0_i32_1 = arith.constant 0 : i32
    return %c0_i32, %c0_i32_0 : i32, i32
  }
  func.func @transform_7(%arg0: i32, %arg1: i32) -> (i32, i32, i32) {
    %c0_i32 = arith.constant 0 : i32
    %c0_i32_0 = arith.constant 0 : i32
    %c0_i32_1 = arith.constant 0 : i32
    return %arg0, %c0_i32, %c0_i32_0 : i32, i32, i32
  }
}

</mosaic_0001>

<bundles_post_ra>
// kernel: compass_forward.1
= control target key start
LH: loop header
LB: loop body
LE: loop exit
PB: predicated region body
PF: predicated region fallthrough
CT: control target
= control target key end

     0   :  { %s1981_s0 = inlined_call_operand.hbm [shape: f32[2,3,4,4,16], index: 0, kind: input, shape index: {}]   ;;  %s1982_s1 = inlined_call_operand.hbm [shape: f32[3,4,16,256], index: 1, kind: input, shape index: {}]   ;;  %s1983_s2 = inlined_call_operand.vmem [shape: f32[1,256], index: 2, kind: input, shape index: {}]   ;;  %s1984_s3 = inlined_call_operand.hbm [shape: f32[256,128], index: 3, kind: input, shape index: {}]   ;;  %s1985_s4 = inlined_call_operand.vmem [shape: f32[1,128], index: 4, kind: input, shape index: {}]   ;;  %s1986_s5 = inlined_call_operand.hbm [shape: f32[128,128], index: 5, kind: input, shape index: {}]   ;;  %s1987_s6 = inlined_call_operand.hbm [shape: f32[1,128], index: 6, kind: input, shape index: {}]   ;;  %s1988_s7 = inlined_call_operand.hbm [shape: f32[2,1,128], index: 7, kind: output, shape index: {}]  }
   0x1   :  { %1990 = sst [smem:[#allocation18_spill]] %s1982_s1 }
   0x2   :  { %1991 = sst [smem:[#allocation19_spill]] %s1984_s3 }
   0x3   :  { %1992 = sst [smem:[#allocation20_spill]] %s1986_s5 }
   0x4   :  { %12 = vsyncpa [#allocation4], 0 }
   0x5   :  { %14 = vsyncpa [#allocation4 + $0x1], 0 }
   0x6   :  { %15 = vsyncpa [#allocation7], 0 }
   0x7   :  { %16 = vsyncpa [#allocation10], 0 }
   0x8   :  { %17 = vsyncpa [#allocation5], 0 }
   0x9   :  { %19 = vsyncpa [#allocation5 + $0x1], 0  ;;  %s1728_s24 = smov 0   ;;  %s1730_s25 = smov 0  }
   0xa   :  { %s1732_s26 = smov 0   ;;  %s1734_s27 = smov 0  }
   0xb   :  { %s1736_s28 = smov 0   ;;  %s1738_s29 = smov 0  }
   0xc LB: > { %s1282_s30 = sadd.s32 4294967295, %s1675_s29   ;;  %s1283_s8 = sadd.s32 4294967294, %s1675_s29   ;;  %s1675_s29 = sphi %s1738_s29, %s25_s29   ;;  %s1671_s28 = sphi %s1736_s28, %s2009_s28   ;;  %s1667_s27 = sphi %s1734_s27, %s2008_s27   ;;  %s1663_s26 = sphi %s1732_s26, %s2007_s26   ;;  %s1659_s25 = sphi %s1730_s25, %s2006_s25   ;;  %s1655_s24 = sphi %s1728_s24, %s2005_s24  }
   0xd   : > { %p59_p0 = scmp.ne.s32.totalorder %s1659_s25, %s1655_s24  ;;  %p1762_p1 = scmp.eq.s32.totalorder %s1282_s30, 0 }
   0xe   : > { %p1766_p2 = scmp.eq.s32.totalorder %s1282_s30, 1  ;;  %p215_p3 = scmp.eq.s32.totalorder %s1283_s8, 1 }
   0xf   : > { %p1772_p4 = por %p1762_p1, %p59_p0  ;;  %p1284_p5 = scmp.ge.s32.totalorder %s1675_s29, 1 }
  0x10   : > { %p1777_p6 = por %p215_p3, %p59_p0  ;;  %p222_p7 = scmp.lt.s32.totalorder %s1675_s29, 3 }
  0x11   : > { %s1998_s1 = sld [smem:[#allocation18_spill]]  ;;  %s1677_s17 = smov [#allocation6]  }
  0x12   : > { %s1996_s12 = scalar_select %p1777_p6, 1, 0 }
  0x13   : > { %p1785_p8 = pnand %p1284_p5, %p222_p7  ;;  %s235_s18 = sshll.u32 %s1677_s17, 4  ;;  %s236_s18 = int_to_ptr.vmem [resolvable:$true] %s235_s18 }
  0x14   : > { %1997 = sst [smem:[#allocation17_spill]] %s1996_s12  ;;  %p1289_p11 = scmp.ge.s32.totalorder %s1675_s29, 2 }
  0x15   : > { %p1345_p9 = pneg %p1785_p8  ;;  %s2001_s5 = sld [smem:[#allocation20_spill]] }
  0x16   : > { %s1678_s23 = smov 256   ;;  %s1679_s30 = smov 16  }
  0x17   : > { %s233_s15 = sshll.u32 %s1998_s1, 4  ;;  %p1793_p10 = pnand %p1345_p9, %p1762_p1  ;;  %s234_s15 = int_to_ptr.hbm [resolvable:$true] %s233_s15 }
  0x18   : > { %s1680_s8 = smov [#allocation9]   ;;  %s2002_s3 = sld [smem:[#allocation19_spill]] }
  0x19   : > { %1348 = dma.hbm_to_vmem [thread:$0]  (!%p1793_p10), %s234_s15, 6144, %s236_s18, [#allocation7], %s1678_s23, %s1678_s23, %s1679_s30  }
  0x1a   : > { %s269_s13 = sshll.u32 %s1680_s8, 4  ;;  %s1681_s12 = smov 128   ;;  %s270_s13 = int_to_ptr.vmem [resolvable:$true] %s269_s13 }
  0x1b   : > { %s267_s22 = sshll.u32 %s2001_s5, 4  ;;  %s1682_s20 = smov 8   ;;  %s268_s22 = int_to_ptr.hbm [resolvable:$true] %s267_s22 }
  0x1c   : > { %1354 = dma.hbm_to_vmem [thread:$0]  (!%p1793_p10), %s268_s22, 2048, %s270_s13, [#allocation10], %s1681_s12, %s1681_s12, %s1682_s20  }
  0x1d   : > { %s282_s21 = sshll.u32 %s1987_s6, 4  ;;  %s1683_s23 = smov [#allocation8]   ;;  %s283_s21 = int_to_ptr.hbm [resolvable:$true] %s282_s21 }
  0x1e   : > { %s250_s1 = sshll.u32 %s2002_s3, 4  ;;  %s252_s30 = sshll.u32 %s1683_s23, 4  ;;  %s251_s1 = int_to_ptr.hbm [resolvable:$true] %s250_s1  ;;  %s253_s30 = int_to_ptr.vmem [resolvable:$true] %s252_s30 }
  0x1f   : > { %1351 = dma.hbm_to_vmem [thread:$0]  (!%p1793_p10), %s251_s1, 4096, %s253_s30, [#allocation7], %s1681_s12, %s1681_s12, %s1682_s20  }
  0x20   : > { %s1684_s8 = smov [#allocation11]   ;;  %s37_s22 = sadd.s32 1, %s1671_s28 }
  0x21   : > { %s284_s14 = sshll.u32 %s1684_s8, 4  ;;  %s46_s13 = sadd.s32 1, %s1663_s26  ;;  %s285_s14 = int_to_ptr.vmem [resolvable:$true] %s284_s14 }
  0x22   : > { %1357 = dma.hbm_to_vmem [thread:$0]  (!%p1793_p10), %s283_s21, 16, %s285_s14, [#allocation10]  }
  0x23   : > { %p39_p12 = scmp.ge.s32.totalorder %s37_s22, 2  ;;  %p53_p13 = scmp.ne.s32.totalorder %s1663_s26, %s1659_s25 }
  0x24   : > { %p54_p0 = scmp.eq.s32.totalorder %s1675_s29, 0  ;;  %p1370_p3 = scmp.lt.s32.totalorder %s1675_s29, 2 }
  0x25   : > { %s2011_s22 = smov (%p39_p12, %s37_s22), 0  ;;  %p1825_p7 = por %p1766_p2, %p53_p13 }
  0x26   : > { %p55_p5 = por %p54_p0, %p53_p13  ;;  %s41_s12 = ssub.s32 %s1671_s28, %s2011_s22 }
  0x27   : > { %s295_s19 = sand.u32 1, %s1663_s26   ;;  %p44_p9 = scmp.eq.s32.totalorder %s41_s12, 0 }
  0x28   : > { %s1322_s17 = smul.u32 48, %s295_s19  ;;  %p1359_p10 = pnand %p1370_p3, %p55_p5 }
  0x29   : > { %s1833_s20 = scalar_select %p44_p9, %s1663_s26, %s46_s13  }
  0x2a   : > { %s1323_s15 = smul.u32 48, %s1671_s28  ;;  %s299_s18 = scalar_lea.vmem [#allocation3], %s1322_s17 }
  0x2b   : > { %s309_s21 = sshll.u32 %s299_s18, 4  ;;  %s296_s14 = scalar_lea.sflag [#allocation4], %s295_s19  ;;  %s310_s21 = int_to_ptr.vmem [resolvable:$true] %s309_s21 }
  0x2c   : > { %s306_s8 = scalar_lea.hbm %s1981_s0, %s1323_s15  ;;  %s1685_s3 = smov 64  }
  0x2d   : > { %s307_s10 = sshll.u32 %s306_s8, 4  ;;  %s1686_s5 = smov 4   ;;  %s308_s10 = int_to_ptr.hbm [resolvable:$true] %s307_s10 }
  0x2e   : > { %1361 = dma.hbm_to_vmem [thread:$0]  (!%p1359_p10), %s308_s10, 768, %s310_s21, %s296_s14, %s1685_s3, %s1685_s3, %s1686_s5  }
  0x2f   : > { %321 = sbr.rel (%p1785_p8) target bundleno = 548 (0x224), region = 48  ;;  %s1842_s13 = sand.u32 (!%p1785_p8), 1, %s1659_s25  }
  0x30   : > { %s1324_s12 = smul.u32 (!%p1785_p8), 48, %s1842_s13  ;;  %s324_s17 = scalar_lea.sflag (!%p1785_p8), [#allocation4], %s1842_s13 }
  0x32   : > { %s1846_s18 = scalar_lea.vmem (!%p1785_p8), [#allocation3], %s1324_s12 }
  0x34   : > { %1638 = dma.done.wait (%p1772_p4), %s324_s17, 768  }
  0x35   : > { %1640 = vsyncadd (%p1772_p4), %s324_s17, 4294966528 }
  0x36   : > { %1642 = dma.done.wait (%p1762_p1), [#allocation7], 10240  }
  0x37   : > { %1644 = vsyncadd (%p1762_p1), [#allocation7], 4294957056 }
  0x38   : > { %1646 = dma.done.wait (%p1762_p1), [#allocation10], 2064  }
  0x39   : > { %1648 = vsyncadd (%p1762_p1), [#allocation10], 4294965232  ;;  %vm383_vm0 = vcmask 125952   ;;  %v1687_v0 = vmov 0.0   ;;  %v443_v1 = vld [vmem:[#allocation6 + $0x30] sm:$0xff]  ;;  %v441_v2 = vld [vmem:[#allocation6 + $0x20] sm:$0xff]  ;;  %s1163_s15 = scalar_lea.hbm %s1988_s7, %s1667_s27 }
  0x3a   : > { %384 = vst.msk [vmem:[#allocation2] sm:$0xf] %vm383_vm0, %v1687_v0  ;;  %v390_v3 = vld [vmem:[%s1846_s18] sm:$0xf]  ;;  %464 = vmatpush.msra.mxu3 %v443_v1  ;;  %v391_v4 = vld [vmem:[%s1846_s18 + $0x4] sm:$0xf] }
  0x3b   : > { %386 = vst.msk [vmem:[#allocation2 + $0x8] sm:$0xf] %vm383_vm0, %v1687_v0  ;;  %v392_v5 = vld [vmem:[%s1846_s18 + $0x8] sm:$0xf]  ;;  %v393_v6 = vld [vmem:[%s1846_s18 + $0xc] sm:$0xf] }
  0x3c   : > { %385 = vst.msk [vmem:[#allocation2 + $0x4] sm:$0xf] %vm383_vm0, %v1687_v0  ;;  %v403_v7 = vsel %vm383_vm0, %v390_v3, 0.0  ;;  %v404_v8 = vsel %vm383_vm0, %v391_v4, 0.0  ;;  %v406_v9 = vsel %vm383_vm0, %v392_v5, 0.0  ;;  %v444_v10 = vld [vmem:[#allocation6 + $0x38] sm:$0xff]  ;;  %465 = vmatpush.msra.mxu3 %v441_v2 }
  0x3d   : > { %v405_v11 = vadd.f32 %v404_v8, %v403_v7  ;;  %v585_v12 = vld [vmem:[#allocation6 + $0x70] sm:$0xff]  ;;  %v583_v13 = vld [vmem:[#allocation6 + $0x60] sm:$0xff]  ;;  %v442_v14 = vld [vmem:[#allocation6 + $0x28] sm:$0xff]  ;;  %v408_v15 = vsel %vm383_vm0, %v393_v6, 0.0  ;;  %vm447_vm1 = vcmask 130048   ;;  %s377_s21 = scalar_lea.vmem [#allocation12], %s1842_s13 }
  0x3e   : > { %484 = vmatpush.msrb.mxu3 %v444_v10  ;;  %604 = vmatpush.msra.mxu2 %v585_v12  ;;  %v535_v16 = vld [vmem:[#allocation6 + $0x50] sm:$0xff]  ;;  %v533_v17 = vld [vmem:[#allocation6 + $0x40] sm:$0xff]  ;;  %v396_v25 = vld [vmem:[%s1846_s18 + $0x18] sm:$0xf]  ;;  %s1165_s23 = sshll.u32 %s377_s21, 4  ;;  %s1167_s30 = sshll.u32 %s1163_s15, 4  ;;  %s1166_s23 = int_to_ptr.vmem [resolvable:$true] %s1165_s23  ;;  %s1168_s30 = int_to_ptr.hbm [resolvable:$true] %s1167_s30 }
  0x3f   : > { %v407_v19 = vadd.f32 %v406_v9, %v405_v11  ;;  %554 = vmatpush.msra.mxu0 %v535_v16  ;;  %v685_v20 = vld [vmem:[#allocation6 + $0xb0] sm:$0xff]  ;;  %v683_v21 = vld [vmem:[#allocation6 + $0xa0] sm:$0xff]  ;;  %v397_v26 = vld [vmem:[%s1846_s18 + $0x1c] sm:$0xf]  ;;  %v413_v30 = vsel %vm383_vm0, %v396_v25, 0.0  ;;  %s1155_s8 = scalar_lea.sflag [#allocation5], %s1842_s13 }
  0x40   : > { %605 = vmatpush.msra.mxu2 %v583_v13  ;;  %485 = vmatpush.msrb.mxu3 %v442_v14  ;;  %v394_v22 = vld [vmem:[%s1846_s18 + $0x10] sm:$0xf]  ;;  %v395_v23 = vld [vmem:[%s1846_s18 + $0x14] sm:$0xf]  ;;  %v415_v34 = vsel %vm383_vm0, %v397_v26, 0.0  ;;  %v536_v48 = vld [vmem:[#allocation6 + $0x58] sm:$0xff] }
  0x41   : > { %v387_v18 = vld [vmem:[#allocation2] sm:$0xf]  ;;  %v409_v24 = vadd.f32 %v408_v15, %v407_v19  ;;  %555 = vmatpush.msra.mxu0 %v533_v17  ;;  %v410_v27 = vsel %vm383_vm0, %v394_v22, 0.0  ;;  %v411_v28 = vsel %vm383_vm0, %v395_v23, 0.0  ;;  %v633_v32 = vld [vmem:[#allocation6 + $0x80] sm:$0xff]  ;;  %574 = vmatpush.msra.mxu1 %v536_v48  ;;  %v534_v50 = vld [vmem:[#allocation6 + $0x48] sm:$0xff] }
  0x42   : > { %704 = vmatpush.msrb.mxu2 %v685_v20  ;;  %v412_v29 = vadd.f32 %v411_v28, %v410_v27  ;;  %v635_v31 = vld [vmem:[#allocation6 + $0x90] sm:$0xff]  ;;  %v400_v40 = vld [vmem:[%s1846_s18 + $0x28] sm:$0xf]  ;;  %v401_v41 = vld [vmem:[%s1846_s18 + $0x2c] sm:$0xf]  ;;  %s1599_s10 = sshra.s32 %s1168_s30, 4  ;;  %s1600_s10 = int_to_ptr.hbm [resolvable:$true] %s1599_s10 }
  0x43   : > { %v424_v33 = vadd.f32 %v409_v24, %v387_v18  ;;  %654 = vmatpush.msrb.mxu0 %v635_v31  ;;  %v388_v35 = vld [vmem:[#allocation2 + $0x4] sm:$0xf]  ;;  %v398_v37 = vld [vmem:[%s1846_s18 + $0x20] sm:$0xf]  ;;  %v399_v38 = vld [vmem:[%s1846_s18 + $0x24] sm:$0xf]  ;;  %575 = vmatpush.msra.mxu1 %v534_v50  ;;  %p1606_p8 = scmp.lt.s32.totalorder %s1600_s10, %s1988_s7 }
  0x44   : > { %705 = vmatpush.msrb.mxu2 %v683_v21  ;;  %v414_v36 = vadd.f32 %v413_v30, %v412_v29  ;;  %v417_v42 = vsel %vm383_vm0, %v398_v37, 0.0  ;;  %v418_v43 = vsel %vm383_vm0, %v399_v38, 0.0  ;;  %v420_v45 = vsel %vm383_vm0, %v400_v40, 0.0  ;;  %v389_v51 = vld [vmem:[#allocation2 + $0x8] sm:$0xf]  ;;  %v438_v56 = vld [vmem:[#allocation6 + $0x10] sm:$0xff] }
  0x45   : > { %427 = vst.msk [vmem:[#allocation2] sm:$0xf] %vm383_vm0, %v424_v33  ;;  %655 = vmatpush.msrb.mxu0 %v633_v32  ;;  %v419_v44 = vadd.f32 %v418_v43, %v417_v42  ;;  %v422_v47 = vsel %vm383_vm0, %v401_v41, 0.0  ;;  %v785_v59 = vld [vmem:[#allocation6 + $0xf0] sm:$0xff]  ;;  %v436_v61 = vld [vmem:[#allocation6] sm:$0xff]  ;;  %v636_v1 = vld [vmem:[#allocation6 + $0x98] sm:$0xff] }
  0x46   : > { %v416_v39 = vadd.f32 %v415_v34, %v414_v36  ;;  %v735_v60 = vld [vmem:[#allocation6 + $0xd0] sm:$0xff]  ;;  %v783_v62 = vld [vmem:[#allocation6 + $0xe0] sm:$0xff]  ;;  %v634_v3 = vld [vmem:[#allocation6 + $0x88] sm:$0xff]  ;;  %674 = vmatpush.msrb.mxu1 %v636_v1  ;;  %s1601_s14 = scalar_lea.hbm %s1600_s10, 1  ;;  %s1605_s27 = scalar_lea.hbm %s1988_s7, 2 }
  0x47   : > { %v421_v49 = vadd.f32 %v420_v45, %v419_v44  ;;  %v733_v63 = vld [vmem:[#allocation6 + $0xc0] sm:$0xff]  ;;  %v439_v4 = vld [vmem:[#allocation6 + $0x18] sm:$0xff]  ;;  %v885_v5 = vld [vmem:[#allocation6 + $0x130] sm:$0xff]  ;;  %p1602_p1 = scmp.ne.s32.totalorder %s1600_s10, %s1601_s14  ;;  %p1607_p12 = scmp.lt.s32.totalorder %s1605_s27, %s1601_s14 }
  0x48   : > { %v425_v46 = vadd.f32 %v416_v39, %v388_v35  ;;  %v835_v6 = vld [vmem:[#allocation6 + $0x110] sm:$0xff]  ;;  %675 = vmatpush.msrb.mxu1 %v634_v3  ;;  %v437_v7 = vld [vmem:[#allocation6 + $0x8] sm:$0xff]  ;;  %v883_v8 = vld [vmem:[#allocation6 + $0x120] sm:$0xff] }
  0x49   : > { %v423_v52 = vadd.f32 %v422_v47, %v421_v49  ;;  %v833_v9 = vld [vmem:[#allocation6 + $0x100] sm:$0xff]  ;;  %v736_v10 = vld [vmem:[#allocation6 + $0xd8] sm:$0xff]  ;;  %v734_v12 = vld [vmem:[#allocation6 + $0xc8] sm:$0xff]  ;;  %p1603_p2 = pnand %p1602_p1, %p1825_p7  ;;  %p1608_p13 = por %p1607_p12, %p1606_p8 }
  0x4a   : > { %428 = vst.msk [vmem:[#allocation2 + $0x4] sm:$0xf] %vm383_vm0, %v425_v46  ;;  %v586_v14 = vld [vmem:[#allocation6 + $0x78] sm:$0xff]  ;;  %v985_v15 = vld [vmem:[#allocation6 + $0x170] sm:$0xff]  ;;  %v584_v17 = vld [vmem:[#allocation6 + $0x68] sm:$0xff] }
  0x4b   : > { %v426_v58 = vadd.f32 %v423_v52, %v389_v51  ;;  %v935_v16 = vld [vmem:[#allocation6 + $0x150] sm:$0xff]  ;;  %v983_v19 = vld [vmem:[#allocation6 + $0x160] sm:$0xff]  ;;  %v836_v21 = vld [vmem:[#allocation6 + $0x118] sm:$0xff]  ;;  %p1604_p4 = pneg %p1603_p2 }
  0x4c   : > { %v1889_v53 = vld [vmem:[#allocation2] sm:$0xf]  ;;  %v933_v20 = vld [vmem:[#allocation6 + $0x140] sm:$0xff]  ;;  %v834_v23 = vld [vmem:[#allocation6 + $0x108] sm:$0xff] }
  0x4d   : > { %v446_v54 = vrot.slane %v1889_v53, 1  ;;  %v587_v55 = vrot.slane %v1889_v53, 3  ;;  %v537_v57 = vrot.slane %v1889_v53, 2  ;;  %429 = vst.msk [vmem:[#allocation2 + $0x8] sm:$0xf] %vm383_vm0, %v426_v58  ;;  %v686_v24 = vld [vmem:[#allocation6 + $0xb8] sm:$0xff]  ;;  %p1609_p0 = pnand %p1608_p13, %p1604_p4 }
  0x4e   : > { %v684_v25 = vld [vmem:[#allocation6 + $0xa8] sm:$0xff]  ;;  %v936_v26 = vld [vmem:[#allocation6 + $0x158] sm:$0xff]  ;;  %v1056_v37 = vld [vmem:[#allocation8 + $0x70] sm:$0xff] }
  0x4f   : > { %1296 = vmatmul.msk.f32.vlgmr.msra.gmra.mxu3 %vm447_vm1, %v446_v54  ;;  %1302 = vmatmul.msk.f32.vlgmr.msra.gmra.mxu2 %vm447_vm1, %v587_v55  ;;  %v934_v27 = vld [vmem:[#allocation6 + $0x148] sm:$0xff]  ;;  %v786_v30 = vld [vmem:[#allocation6 + $0xf8] sm:$0xff]  ;;  %v1054_v39 = vld [vmem:[#allocation8 + $0x60] sm:$0xff] }
  0x50   : > { %506 = vmatpush.msra.mxu3 %v438_v56  ;;  %1300 = vmatmul.msk.f32.vlgmr.msra.gmra.mxu0 %vm447_vm1, %v537_v57  ;;  %v784_v31 = vld [vmem:[#allocation6 + $0xe8] sm:$0xff]  ;;  %v886_v32 = vld [vmem:[#allocation6 + $0x138] sm:$0xff]  ;;  %v1052_v41 = vld [vmem:[#allocation8 + $0x50] sm:$0xff] }
  0x51   : > { %v1900_v0 = vld [vmem:[#allocation2 + $0x4] sm:$0xf]  ;;  %804 = vmatpush.msra.mxu2 %v785_v59  ;;  %754 = vmatpush.msra.mxu0 %v735_v60  ;;  %v884_v33 = vld [vmem:[#allocation6 + $0x128] sm:$0xff]  ;;  %v1050_v43 = vld [vmem:[#allocation8 + $0x40] sm:$0xff] }
  0x52   : > { %507 = vmatpush.msra.mxu3 %v436_v61  ;;  %1301 = vmatmul.msk.f32.vlgmr.msra.gmra.mxu1 %vm447_vm1, %v537_v57  ;;  %v687_v2 = vrot.slane %v1900_v0, 1  ;;  %v787_v11 = vrot.slane %v1900_v0, 3  ;;  %v737_v13 = vrot.slane %v1900_v0, 2  ;;  %v986_v34 = vld [vmem:[#allocation6 + $0x178] sm:$0xff]  ;;  %v984_v35 = vld [vmem:[#allocation6 + $0x168] sm:$0xff]  ;;  %v1048_v46 = vld [vmem:[#allocation8 + $0x30] sm:$0xff] }
  0x53   : > { %805 = vmatpush.msra.mxu2 %v783_v62  ;;  %755 = vmatpush.msra.mxu0 %v733_v63  ;;  %v1057_v36 = vld [vmem:[#allocation8 + $0x78] sm:$0xff]  ;;  %v1055_v38 = vld [vmem:[#allocation8 + $0x68] sm:$0xff]  ;;  %v1046_v50 = vld [vmem:[#allocation8 + $0x20] sm:$0xff] }
  0x54   : > { %774 = vmatpush.msra.mxu1 %v736_v10  ;;  %v435_v18 = vld [vmem:[#allocation2 + $0x8] sm:$0xf]  ;;  %v1051_v42 = vld [vmem:[#allocation8 + $0x48] sm:$0xff]  ;;  %v1042_v58 = vld [vmem:[#allocation8] sm:$0xff] }
  0x55   : > { %v887_v22 = vrot.slane %v435_v18, 1  ;;  %v987_v28 = vrot.slane %v435_v18, 3  ;;  %v937_v29 = vrot.slane %v435_v18, 2  ;;  %v1053_v40 = vld [vmem:[#allocation8 + $0x58] sm:$0xff]  ;;  %v1047_v47 = vld [vmem:[#allocation8 + $0x28] sm:$0xff]  ;;  %v1072_v59 = vld [vmem:[#allocation8 + $0xf0] sm:$0xff] }
  0x56   : > { %775 = vmatpush.msra.mxu1 %v734_v12  ;;  %v1049_v45 = vld [vmem:[#allocation8 + $0x38] sm:$0xff]  ;;  %v1071_v60 = vld [vmem:[#allocation8 + $0xe8] sm:$0xff]  ;;  %v1070_v61 = vld [vmem:[#allocation8 + $0xe0] sm:$0xff] }
  0x57   : > { %1297 = vmatmul.msk.f32.vlgmr.msrb.gmra.mxu3 %vm447_vm1, %v446_v54  ;;  %1306 = vmatmul.msk.f32.vlgmr.msrb.gmra.mxu2 %vm447_vm1, %v687_v2  ;;  %v1045_v52 = vld [vmem:[#allocation8 + $0x18] sm:$0xff]  ;;  %v1043_v54 = vld [vmem:[#allocation8 + $0x8] sm:$0xff]  ;;  %v1068_v3 = vld [vmem:[#allocation8 + $0xd0] sm:$0xff] }
  0x58   : > { %526 = vmatpush.msrb.mxu3 %v439_v4  ;;  %1304 = vmatmul.msk.f32.vlgmr.msrb.gmra.mxu0 %vm447_vm1, %v1900_v0  ;;  %v1069_v63 = vld [vmem:[#allocation8 + $0xd8] sm:$0xff] }
  0x59   : > { %904 = vmatpush.msrb.mxu2 %v885_v5  ;;  %854 = vmatpush.msrb.mxu0 %v835_v6  ;;  %v1067_v5 = vld [vmem:[#allocation8 + $0xc8] sm:$0xff]  ;;  %v1066_v6 = vld [vmem:[#allocation8 + $0xc0] sm:$0xff] }
  0x5a   : > { %527 = vmatpush.msrb.mxu3 %v437_v7  ;;  %1305 = vmatmul.msk.f32.vlgmr.msrb.gmra.mxu1 %vm447_vm1, %v1900_v0 }
  0x5b   : > { %905 = vmatpush.msrb.mxu2 %v883_v8  ;;  %855 = vmatpush.msrb.mxu0 %v833_v9 }
  0x5c   : > { %874 = vmatpush.msrb.mxu1 %v836_v21 }
  0x5e   : > { %875 = vmatpush.msrb.mxu1 %v834_v23 }
  0x5f   : > { %1298 = vmatmul.msk.f32.vlgmr.msra.gmra.mxu3 %vm447_vm1, %v1889_v53  ;;  %1310 = vmatmul.msk.f32.vlgmr.msra.gmra.mxu2 %vm447_vm1, %v787_v11 }
  0x60   : > { %624 = vmatpush.msra.mxu3 %v586_v14  ;;  %1308 = vmatmul.msk.f32.vlgmr.msra.gmra.mxu0 %vm447_vm1, %v737_v13 }
  0x61   : > { %1004 = vmatpush.msra.mxu2 %v985_v15  ;;  %954 = vmatpush.msra.mxu0 %v935_v16  ;;  %v1064_v15 = vld [vmem:[#allocation8 + $0xb0] sm:$0xff] }
  0x62   : > { %625 = vmatpush.msra.mxu3 %v584_v17  ;;  %1309 = vmatmul.msk.f32.vlgmr.msra.gmra.mxu1 %vm447_vm1, %v737_v13  ;;  %v1063_v17 = vld [vmem:[#allocation8 + $0xa8] sm:$0xff] }
  0x63   : > { %1005 = vmatpush.msra.mxu2 %v983_v19  ;;  %955 = vmatpush.msra.mxu0 %v933_v20 }
  0x64   : > { %974 = vmatpush.msra.mxu1 %v936_v26  ;;  %v1060_v26 = vld [vmem:[#allocation8 + $0x90] sm:$0xff] }
  0x66   : > { %975 = vmatpush.msra.mxu1 %v934_v27 }
  0x67   : > { %1299 = vmatmul.msk.f32.vlgmr.msrb.gmra.mxu3 %vm447_vm1, %v1889_v53  ;;  %1314 = vmatmul.msk.f32.vlgmr.msrb.gmra.mxu2 %vm447_vm1, %v887_v22  ;;  %v1044_v53 = vld [vmem:[#allocation8 + $0x10] sm:$0xff] }
  0x68   : > { %724 = vmatpush.msrb.mxu3 %v686_v24  ;;  %1312 = vmatmul.msk.f32.vlgmr.msrb.gmra.mxu0 %vm447_vm1, %v435_v18 }
  0x69   : > { %1075 = vmatpush.msrb.mxu0 %v1057_v36 }
  0x6a   : > { %725 = vmatpush.msrb.mxu3 %v684_v25  ;;  %1313 = vmatmul.msk.f32.vlgmr.msrb.gmra.mxu1 %vm447_vm1, %v435_v18  ;;  %v1062_v18 = vld [vmem:[#allocation8 + $0xa0] sm:$0xff] }
  0x6b   : > { %1076 = vmatpush.msrb.mxu0 %v1056_v37 }
  0x6d   : > { %1077 = vmatpush.msrb.mxu0 %v1055_v38 }
  0x6f   : > { %1303 = vmatmul.msk.f32.vlgmr.msra.gmra.mxu3 %vm447_vm1, %v587_v55  ;;  %1318 = vmatmul.msk.f32.vlgmr.msra.gmra.mxu2 %vm447_vm1, %v987_v28  ;;  %v1073_v55 = vld [vmem:[#allocation8 + $0xf8] sm:$0xff] }
  0x70   : > { %824 = vmatpush.msra.mxu3 %v786_v30  ;;  %1316 = vmatmul.msk.f32.vlgmr.msra.gmra.mxu0 %vm447_vm1, %v937_v29 }
  0x71   : > { %1078 = vmatpush.msrb.mxu0 %v1054_v39  ;;  %1095 = vmatpush.msrb.mxu1 %v1073_v55 }
  0x72   : > { %825 = vmatpush.msra.mxu3 %v784_v31  ;;  %1317 = vmatmul.msk.f32.vlgmr.msra.gmra.mxu1 %vm447_vm1, %v937_v29  ;;  %v1059_v31 = vld [vmem:[#allocation8 + $0x88] sm:$0xff] }
  0x73   : > { %1079 = vmatpush.msrb.mxu0 %v1053_v40  ;;  %1096 = vmatpush.msrb.mxu1 %v1072_v59  ;;  %v1129_v59 = vld [vmem:[#allocation9 + $0x68] sm:$0xff] }
  0x75   : > { %1080 = vmatpush.msrb.mxu0 %v1052_v41  ;;  %1097 = vmatpush.msrb.mxu1 %v1071_v60  ;;  %v1128_v60 = vld [vmem:[#allocation9 + $0x60] sm:$0xff] }
  0x77   : > { %1307 = vmatmul.msk.f32.vlgmr.msrb.gmra.mxu3 %vm447_vm1, %v687_v2  ;;  %1081 = vmatpush.msrb.mxu0 %v1051_v42 }
  0x78   : > { %924 = vmatpush.msrb.mxu3 %v886_v32  ;;  %1098 = vmatpush.msrb.mxu1 %v1070_v61  ;;  %v1127_v61 = vld [vmem:[#allocation9 + $0x58] sm:$0xff] }
  0x79   : > { %1082 = vmatpush.msrb.mxu0 %v1050_v43 }
  0x7a   : > { %925 = vmatpush.msrb.mxu3 %v884_v33  ;;  %1099 = vmatpush.msrb.mxu1 %v1069_v63  ;;  %v1125_v63 = vld [vmem:[#allocation9 + $0x48] sm:$0xff] }
  0x7b   : > { %1083 = vmatpush.msrb.mxu0 %v1049_v45 }
  0x7c   : > { %1100 = vmatpush.msrb.mxu1 %v1068_v3  ;;  %v1121_v3 = vld [vmem:[#allocation9 + $0x28] sm:$0xff] }
  0x7d   : > { %1084 = vmatpush.msrb.mxu0 %v1048_v46 }
  0x7e   : > { %1101 = vmatpush.msrb.mxu1 %v1067_v5  ;;  %v1119_v5 = vld [vmem:[#allocation9 + $0x18] sm:$0xff] }
  0x7f   : > { %1311 = vmatmul.msk.f32.vlgmr.msra.gmra.mxu3 %vm447_vm1, %v787_v11  ;;  %1085 = vmatpush.msrb.mxu0 %v1047_v47  ;;  %v1065_v11 = vld [vmem:[#allocation8 + $0xb8] sm:$0xff] }
  0x80   : > { %1024 = vmatpush.msra.mxu3 %v986_v34  ;;  %1102 = vmatpush.msrb.mxu1 %v1066_v6  ;;  %v1058_v34 = vld [vmem:[#allocation8 + $0x80] sm:$0xff]  ;;  %v1118_v6 = vld [vmem:[#allocation9 + $0x10] sm:$0xff] }
  0x81   : > { %1086 = vmatpush.msrb.mxu0 %v1046_v50 }
  0x82   : > { %1025 = vmatpush.msra.mxu3 %v984_v35  ;;  %1103 = vmatpush.msrb.mxu1 %v1065_v11 }
  0x83   : > { %1087 = vmatpush.msrb.mxu0 %v1045_v52 }
  0x84   : > { %1104 = vmatpush.msrb.mxu1 %v1064_v15  ;;  %v1132_v15 = vld [vmem:[#allocation11] sm:$0x1] }
  0x85   : > { %1088 = vmatpush.msrb.mxu0 %v1044_v53 }
  0x86   : > { %1105 = vmatpush.msrb.mxu1 %v1063_v17 }
  0x87   : > { %1315 = vmatmul.msk.f32.vlgmr.msrb.gmra.mxu3 %vm447_vm1, %v887_v22  ;;  %1089 = vmatpush.msrb.mxu0 %v1043_v54  ;;  %v1061_v22 = vld [vmem:[#allocation8 + $0x98] sm:$0xff] }
  0x88   : > { %1106 = vmatpush.msrb.mxu1 %v1062_v18 }
  0x89   : > { %1090 = vmatpush.msrb.mxu0 %v1042_v58  ;;  %v1130_v58 = vld [vmem:[#allocation9 + $0x70] sm:$0xff] }
  0x8a   : > { %1107 = vmatpush.msrb.mxu1 %v1061_v22 }
  0x8c   : > { %1108 = vmatpush.msrb.mxu1 %v1060_v26 }
  0x8e   : > { %1109 = vmatpush.msrb.mxu1 %v1059_v31 }
  0x8f   : > { %1319 = vmatmul.msk.f32.vlgmr.msra.gmra.mxu3 %vm447_vm1, %v987_v28  ;;  %v1034_v28 = vld [vmem:[%s1983_s2] sm:$0x3] }
  0x90   : > { %v1036_v33 = vperm.slane %v1034_v28, 0  ;;  %1110 = vmatpush.msrb.mxu1 %v1058_v34  ;;  %v1037_v54 = vperm.slane %v1034_v28, 1 }
  0xcd   : > { %v557_v44 = vpop.f32.mrf.mxu0 }
  0xcf   : > { %v577_v7 = vpop.f32.mrf.mxu1 }
  0xd2   : > { %v467_v48 = vpop.f32.mrf.mxu3  ;;  %v607_v49 = vpop.f32.mrf.mxu2 }
  0xd5   : > { %v657_v51 = vpop.f32.mrf.mxu0 }
  0xd7   : > { %v677_v20 = vpop.f32.mrf.mxu1 }
  0xda   : > { %v487_v56 = vpop.f32.mrf.mxu3  ;;  %v707_v57 = vpop.f32.mrf.mxu2 }
  0xdd   : > { %v757_v62 = vpop.f32.mrf.mxu0 }
  0xdf   : > { %v777_v38 = vpop.f32.mrf.mxu1 }
  0xe2   : > { %v509_v0 = vpop.f32.mrf.mxu3  ;;  %v807_v1 = vpop.f32.mrf.mxu2 }
  0xe3   : > { %v510_v2 = vadd.f32 %v509_v0, %v467_v48  ;;  %v1124_v0 = vld [vmem:[#allocation9 + $0x40] sm:$0xff] }
  0xe5   : > { %v580_v4 = vadd.f32 %v557_v44, %v510_v2  ;;  %v857_v9 = vpop.f32.mrf.mxu0  ;;  %v1122_v2 = vld [vmem:[#allocation9 + $0x30] sm:$0xff] }
  0xe7   : > { %v630_v8 = vadd.f32 %v607_v49, %v580_v4  ;;  %v877_v44 = vpop.f32.mrf.mxu1  ;;  %v1120_v4 = vld [vmem:[#allocation9 + $0x20] sm:$0xff] }
  0xe9   : > { %v680_v10 = vadd.f32 %v657_v51, %v630_v8  ;;  %v1116_v8 = vld [vmem:[#allocation9] sm:$0xff] }
  0xea   : > { %v529_v12 = vpop.f32.mrf.mxu3  ;;  %v907_v13 = vpop.f32.mrf.mxu2 }
  0xeb   : > { %v730_v14 = vadd.f32 %v707_v57, %v680_v10  ;;  %v530_v29 = vadd.f32 %v529_v12, %v487_v56  ;;  %v1131_v57 = vld [vmem:[#allocation9 + $0x78] sm:$0xff] }
  0xec   : > { %1133 = vmatpush.msrb.mxu2 %v1131_v57 }
  0xed   : > { %v780_v16 = vadd.f32 %v757_v62, %v730_v14  ;;  %v957_v24 = vpop.f32.mrf.mxu0  ;;  %v581_v35 = vadd.f32 %v577_v7, %v530_v29  ;;  %v1126_v62 = vld [vmem:[#allocation9 + $0x50] sm:$0xff]  ;;  %v1117_v7 = vld [vmem:[#allocation9 + $0x8] sm:$0xff] }
  0xee   : > { %1134 = vmatpush.msrb.mxu2 %v1130_v58 }
  0xef   : > { %v830_v19 = vadd.f32 %v807_v1, %v780_v16  ;;  %v977_v50 = vpop.f32.mrf.mxu1  ;;  %v1123_v1 = vld [vmem:[#allocation9 + $0x38] sm:$0xff] }
  0xf0   : > { %1135 = vmatpush.msrb.mxu2 %v1129_v59 }
  0xf1   : > { %v880_v21 = vadd.f32 %v857_v9, %v830_v19  ;;  %v1074_v9 = vld [vmem:[%s1985_s4] sm:$0x1] }
  0xf2   : > { %v627_v23 = vpop.f32.mrf.mxu3  ;;  %v1007_v27 = vpop.f32.mrf.mxu2  ;;  %1136 = vmatpush.msrb.mxu2 %v1128_v60 }
  0xf3   : > { %v930_v25 = vadd.f32 %v907_v13, %v880_v21  ;;  %v631_v39 = vadd.f32 %v627_v23, %v581_v35 }
  0xf4   : > { %1137 = vmatpush.msrb.mxu2 %v1127_v61 }
  0xf5   : > { %v980_v30 = vadd.f32 %v957_v24, %v930_v25  ;;  %v681_v41 = vadd.f32 %v677_v20, %v631_v39 }
  0xf6   : > { %1138 = vmatpush.msrb.mxu2 %v1126_v62 }
  0xf7   : > { %v1030_v32 = vadd.f32 %v1007_v27, %v980_v30 }
  0xf8   : > { %1139 = vmatpush.msrb.mxu2 %v1125_v63 }
  0xf9   : > { %v1032_v36 = vmul.f32 0.0625, %v1030_v32 }
  0xfa   : > { %v727_v37 = vpop.f32.mrf.mxu3  ;;  %1140 = vmatpush.msrb.mxu2 %v1124_v0 }
  0xfb   : > { %v1040_v40 = vadd.f32 %v1036_v33, %v1032_v36  ;;  %v731_v42 = vadd.f32 %v727_v37, %v681_v41 }
  0xfc   : > { %1141 = vmatpush.msrb.mxu2 %v1123_v1 }
  0xfd   : > { %1091 = vmatmul.f32.vlgmr.msrb.gmra.mxu0 %v1040_v40  ;;  %v781_v45 = vadd.f32 %v777_v38, %v731_v42 }
  0xfe   : > { %1142 = vmatpush.msrb.mxu2 %v1122_v2 }
 0x100   : > { %1143 = vmatpush.msrb.mxu2 %v1121_v3 }
 0x102   : > { %v827_v43 = vpop.f32.mrf.mxu3  ;;  %1144 = vmatpush.msrb.mxu2 %v1120_v4 }
 0x103   : > { %v831_v46 = vadd.f32 %v827_v43, %v781_v45 }
 0x104   : > { %1145 = vmatpush.msrb.mxu2 %v1119_v5 }
 0x105   : > { %v881_v48 = vadd.f32 %v877_v44, %v831_v46 }
 0x106   : > { %1146 = vmatpush.msrb.mxu2 %v1118_v6 }
 0x108   : > { %1147 = vmatpush.msrb.mxu2 %v1117_v7 }
 0x10a   : > { %v927_v47 = vpop.f32.mrf.mxu3  ;;  %1148 = vmatpush.msrb.mxu2 %v1116_v8 }
 0x10b   : > { %v931_v49 = vadd.f32 %v927_v47, %v881_v48 }
 0x10d   : > { %v981_v51 = vadd.f32 %v977_v50, %v931_v49 }
 0x112   : > { %v1027_v52 = vpop.f32.mrf.mxu3 }
 0x113   : > { %v1031_v53 = vadd.f32 %v1027_v52, %v981_v51 }
 0x115   : > { %v1033_v55 = vmul.f32 0.0625, %v1031_v53 }
 0x117   : > { %v1041_v56 = vadd.f32 %v1037_v54, %v1033_v55 }
 0x119   : > { %1111 = vmatmul.f32.vlgmr.msrb.gmra.mxu1 %v1041_v56 }
 0x17a   : > { %v1092_v10 = vpop.f32.mrf.mxu0 }
 0x17b   : > { %v1093_v11 = vadd.f32 %v1092_v10, %v1074_v9 }
 0x196   : > { %v1112_v12 = vpop.f32.mrf.mxu1 }
 0x197   : > { %v1113_v13 = vadd.f32 %v1112_v12, %v1093_v11 }
 0x199   : > { %v1115_v14 = vmax.f32 %v1113_v13, 0.0 }
 0x19b   : > { %1149 = vmatmul.f32.vlgmr.msrb.gmra.mxu2 %v1115_v14 }
 0x21e   : > { %v1150_v16 = vpop.f32.mrf.mxu2 }
 0x21f   : > { %v1151_v17 = vadd.f32 %v1150_v16, %v1132_v15 }
 0x221   : > { %1153 = vst [vmem:[%s377_s21] sm:$0x1] %v1151_v17 }
 0x222   : > { %1612 = shalt.err (!%p1609_p0)
}
 0x223   : > { %1343 = dma.vmem_to_hbm [thread:$0]  (%p1825_p7), %s1166_s23, 16, %s1168_s30, %s1155_s8  }
 0x224 PF: > { %s1179_s5 = sand.u32 1, %s1655_s24   ;;  %p1363_p3 = pnand %p1289_p11, %p1777_p6 }
 0x225   : > { %s1180_s9 = scalar_lea.sflag [#allocation5], %s1179_s5 }
 0x226   : > { %p1364_p5 = pneg %p1363_p3 }
 0x228   : > { %1650 = dma.done.wait (%p1364_p5), %s1180_s9, 16  }
 0x229   : > { %1652 = vsyncadd (%p1364_p5), %s1180_s9, 4294967280  ;;  %s25_s29 = sadd.s32 1, %s1675_s29   ;;  %s2005_s24 = smov %s1659_s25 }
 0x22a   : > { %p22_p9 = scmp.ge.s32.totalorder %s25_s29, 4   ;;  %s2006_s25 = smov %s1663_s26 }
 0x22b   : > { %s2007_s26 = smov %s1833_s20  ;;  %s2008_s27 = smov %s1671_s28 }
 0x22c   : > { %s2009_s28 = smov %s2011_s22  ;;  %24 = sbr.rel (!%p22_p9) target bundleno = 12 (0xc), region = 128 }
 0x231   :  { %1185 = vsyncpa [#allocation4], 1 }
 0x232   :  { %1187 = vsyncpa [#allocation4 + $0x1], 1 }
 0x233   :  { %1188 = vsyncpa [#allocation7], 1 }
 0x234   :  { %1189 = vsyncpa [#allocation10], 1 }
 0x235   :  { %1190 = vsyncpa [#allocation5], 1 }
 0x236   :  { %1192 = vsyncpa [#allocation5 + $0x1], 1 }

</bundles_post_ra>
